<compile_context>
chip_gen: v6e
topology: v6e:2x2x1
jax: 0.10.0
libtpu: 0.0.40
codegen_flags: <defaults>
</compile_context>

<pallas_src>
import functools

import jax
import jax.numpy as jnp
from jax.experimental import pallas as pl
from jax.experimental.pallas import tpu as pltpu


def _round_up(x, m):
    return ((x + m - 1) // m) * m


# ----------------------------------------------------------------------------
# Tiled matmul + bias kernel:  out = x @ w + b
# grid = (M/tm, N/tn, K/tk), accumulator in VMEM, bias folded in on last K step.
# ----------------------------------------------------------------------------
def _matmul_bias_kernel(x_ref, w_ref, b_ref, o_ref, acc_ref):
    k = pl.program_id(2)

    @pl.when(k == 0)
    def _():
        acc_ref[...] = jnp.zeros_like(acc_ref)

    acc_ref[...] += jnp.dot(x_ref[...], w_ref[...],
                            preferred_element_type=jnp.float32)

    @pl.when(k == pl.num_programs(2) - 1)
    def _():
        o_ref[...] = (acc_ref[...] + b_ref[...]).astype(o_ref.dtype)


def matmul_bias(x, w, b, *, tm=256, tn=256, tk=512):
    """x: (M, K), w: (K, N), b: (N,) or (1, N)  ->  (M, N) float32."""
    M, K = x.shape
    K2, N = w.shape
    assert K == K2

    Mp = _round_up(M, 8)
    tm = min(tm, Mp)
    Mp = _round_up(Mp, tm)
    Np = _round_up(N, 128)
    tn = min(tn, Np)
    Np = _round_up(Np, tn)
    Kp = _round_up(K, 128)
    tk = min(tk, Kp)
    Kp = _round_up(Kp, tk)

    xp = jnp.pad(x, ((0, Mp - M), (0, Kp - K)))
    wp = jnp.pad(w, ((0, Kp - K), (0, Np - N)))
    bp = jnp.pad(jnp.reshape(b, (1, -1)), ((0, 0), (0, Np - N)))

    grid = (Mp // tm, Np // tn, Kp // tk)
    out = pl.pallas_call(
        _matmul_bias_kernel,
        grid=grid,
        in_specs=[
            pl.BlockSpec((tm, tk), lambda i, j, k: (i, k)),
            pl.BlockSpec((tk, tn), lambda i, j, k: (k, j)),
            pl.BlockSpec((1, tn), lambda i, j, k: (0, j)),
        ],
        out_specs=pl.BlockSpec((tm, tn), lambda i, j, k: (i, j)),
        out_shape=jax.ShapeDtypeStruct((Mp, Np), jnp.float32),
        scratch_shapes=[pltpu.VMEM((tm, tn), jnp.float32)],
        compiler_params=pltpu.CompilerParams(
            dimension_semantics=("parallel", "parallel", "arbitrary")),
    )(xp, wp, bp)
    return out[:M, :N]


# ----------------------------------------------------------------------------
# LSTM recurrence kernel.  Input gates xg = x @ W_ih^T + b are precomputed
# (hoisted GEMM); only h_prev @ W_hh^T stays in the loop.
# grid = (T/Tc,), each step handles Tc timesteps; h/c live in VMEM scratch.
# Gate order (PyTorch): i, f, g, o — each gate occupies a 128-aligned Hp slab.
# ----------------------------------------------------------------------------
def _lstm_rec_kernel(xg_ref, h0_ref, c0_ref, whh_ref,
                     out_ref, hT_ref, cT_ref,
                     h_scr, c_scr, *, Hp, Tc):
    t = pl.program_id(0)

    @pl.when(t == 0)
    def _():
        h_scr[...] = h0_ref[...]
        c_scr[...] = c0_ref[...]

    whh = whh_ref[...]                       # (Hp, 4Hp), pre-transposed

    def step(s, carry):
        h_prev = h_scr[...]                  # (Bp, Hp)
        c_prev = c_scr[...]                  # (Bp, Hp)
        gates = xg_ref[s] + jnp.dot(h_prev, whh,
                                    preferred_element_type=jnp.float32)
        i_g = jax.nn.sigmoid(gates[:, 0 * Hp:1 * Hp])
        f_g = jax.nn.sigmoid(gates[:, 1 * Hp:2 * Hp])
        g_g = jnp.tanh(gates[:, 2 * Hp:3 * Hp])
        o_g = jax.nn.sigmoid(gates[:, 3 * Hp:4 * Hp])
        c_new = f_g * c_prev + i_g * g_g
        h_new = o_g * jnp.tanh(c_new)
        c_scr[...] = c_new
        h_scr[...] = h_new
        out_ref[s] = h_new                   # lane-dense (Bp, Hp) store
        return carry

    jax.lax.fori_loop(0, Tc, step, 0, unroll=True)

    # Final state written exactly once (outputs are grid-resident).
    @pl.when(t == pl.num_programs(0) - 1)
    def _():
        hT_ref[...] = h_scr[...]
        cT_ref[...] = c_scr[...]


def _pick_chunk(T, max_chunk=16):
    for tc in range(min(T, max_chunk), 0, -1):
        if T % tc == 0:
            return tc
    return 1


def lstm_layer(x_tm, h0, c0, w_ih_t, w_hh_t, b_row):
    """One LSTM layer (padded shapes).

    x_tm   : (T, Bp, Ep)    time-major input
    h0, c0 : (Bp, Hp)       initial state
    w_ih_t : (Ep, 4Hp), w_hh_t : (Hp, 4Hp), b_row : (1, 4Hp)
    returns (out (T, Bp, Hp), hT (Bp, Hp), cT (Bp, Hp))
    """
    T, Bp, Ep = x_tm.shape
    Hp = h0.shape[-1]

    # Hoisted input projection: one big GEMM, bias folded in.
    xg = matmul_bias(x_tm.reshape(T * Bp, Ep), w_ih_t, b_row)
    xg = xg.reshape(T, Bp, 4 * Hp)

    Tc = _pick_chunk(T)
    grid = (T // Tc,)
    kernel = functools.partial(_lstm_rec_kernel, Hp=Hp, Tc=Tc)

    out_shapes = [
        jax.ShapeDtypeStruct((T, Bp, Hp), jnp.float32),
        jax.ShapeDtypeStruct((Bp, Hp), jnp.float32),
        jax.ShapeDtypeStruct((Bp, Hp), jnp.float32),
    ]
    return pl.pallas_call(
        kernel,
        grid=grid,
        in_specs=[
            pl.BlockSpec((Tc, Bp, 4 * Hp), lambda t: (t, 0, 0)),
            pl.BlockSpec((Bp, Hp), lambda t: (0, 0)),
            pl.BlockSpec((Bp, Hp), lambda t: (0, 0)),
            pl.BlockSpec((Hp, 4 * Hp), lambda t: (0, 0)),
        ],
        out_specs=[
            pl.BlockSpec((Tc, Bp, Hp), lambda t: (t, 0, 0)),
            pl.BlockSpec((Bp, Hp), lambda t: (0, 0)),
            pl.BlockSpec((Bp, Hp), lambda t: (0, 0)),
        ],
        out_shape=out_shapes,
        scratch_shapes=[
            pltpu.VMEM((Bp, Hp), jnp.float32),
            pltpu.VMEM((Bp, Hp), jnp.float32),
        ],
        compiler_params=pltpu.CompilerParams(
            dimension_semantics=("arbitrary",)),
    )(xg, h0, c0, w_hh_t)


def run_multilayer_lstm(x_tm, h0_stack, c0_stack, layer_params):
    """Stacked LSTM (PyTorch semantics: layer l>0 consumes h of layer l-1)."""
    hs, cs = [], []
    inp = x_tm
    for l, p in enumerate(layer_params):
        out, hT, cT = lstm_layer(inp, h0_stack[l], c0_stack[l],
                                 p["w_ih_t"], p["w_hh_t"], p["b"])
        hs.append(hT)
        cs.append(cT)
        inp = out
    return inp, jnp.stack(hs, axis=0), jnp.stack(cs, axis=0)


# ----------------------------------------------------------------------------
# Parameters.  Raw params mirror the PyTorch layout (used by the reference);
# prepare_kernel_params() pads + transposes them for the Pallas kernels.
# ----------------------------------------------------------------------------
def make_params(key, vocab_size, embed_size, num_layers):
    H = embed_size
    bound = 1.0 / float(H) ** 0.5

    def uni(k, shape, bd):
        return jax.random.uniform(k, shape, jnp.float32, -bd, bd)

    keys = jax.random.split(key, 4)
    emb = jax.random.normal(keys[0], (vocab_size, embed_size), jnp.float32)

    def make_lstm(k):
        layers = []
        ks = jax.random.split(k, num_layers)
        for l in range(num_layers):
            in_size = embed_size  # input_size == hidden_size in this module
            kk = jax.random.split(ks[l], 4)
            layers.append({
                "w_ih": uni(kk[0], (4 * H, in_size), bound),
                "w_hh": uni(kk[1], (4 * H, H), bound),
                "b_ih": uni(kk[2], (4 * H,), bound),
                "b_hh": uni(kk[3], (4 * H,), bound),
            })
        return layers

    enc = make_lstm(keys[1])
    dec = make_lstm(keys[2])

    kfc = jax.random.split(keys[3], 2)
    fc_bound = 1.0 / float(embed_size) ** 0.5
    fc_w = uni(kfc[0], (vocab_size, embed_size), fc_bound)
    fc_b = uni(kfc[1], (vocab_size,), fc_bound)
    return {"emb": emb, "enc": enc, "dec": dec, "fc_w": fc_w, "fc_b": fc_b}


def prepare_kernel_params(raw, embed_size, vocab_size):
    H = embed_size
    Hp = _round_up(H, 128)
    Ep = Hp                       # input size == hidden size
    Vp = _round_up(vocab_size, 128)

    def pad_gate_rows(w):         # (4H, X) -> (4Hp, X), zero-pad per gate
        w4 = w.reshape(4, H, w.shape[-1])
        w4 = jnp.pad(w4, ((0, 0), (0, Hp - H), (0, 0)))
        return w4.reshape(4 * Hp, w.shape[-1])

    def pad_gate_vec(b):          # (4H,) -> (1, 4Hp)
        b4 = jnp.pad(b.reshape(4, H), ((0, 0), (0, Hp - H)))
        return b4.reshape(1, 4 * Hp)

    def prep_lstm(layers):
        out = []
        for p in layers:
            w_ih = pad_gate_rows(p["w_ih"])                       # (4Hp, E)
            w_ih = jnp.pad(w_ih, ((0, 0), (0, Ep - w_ih.shape[1])))
            w_hh = pad_gate_rows(p["w_hh"])                       # (4Hp, H)
            w_hh = jnp.pad(w_hh, ((0, 0), (0, Hp - w_hh.shape[1])))
            out.append({
                "w_ih_t": jnp.transpose(w_ih),                    # (Ep, 4Hp)
                "w_hh_t": jnp.transpose(w_hh),                    # (Hp, 4Hp)
                "b": pad_gate_vec(p["b_ih"] + p["b_hh"]),         # (1, 4Hp)
            })
        return out

    emb_p = jnp.pad(raw["emb"], ((0, 0), (0, Ep - H)))            # (V, Ep)
    fc_w_t = jnp.pad(jnp.transpose(raw["fc_w"]),
                     ((0, Hp - H), (0, Vp - vocab_size)))         # (Hp, Vp)
    fc_b = jnp.pad(raw["fc_b"], (0, Vp - vocab_size)).reshape(1, Vp)
    return {"emb_p": emb_p, "enc": prep_lstm(raw["enc"]),
            "dec": prep_lstm(raw["dec"]),
            "fc_w_t": fc_w_t, "fc_b": fc_b, "Hp": Hp, "Vp": Vp}


# ----------------------------------------------------------------------------
# Full forward pass (matches BarlineS2SLSTM.forward).
# ----------------------------------------------------------------------------
def barline_s2s_forward(kparams, src_ids, tgt_ids, *, num_layers,
                        embed_size, vocab_size):
    B, _ = src_ids.shape
    _, Tt = tgt_ids.shape
    H = embed_size
    Hp = kparams["Hp"]
    Bp = _round_up(B, 8)

    # Embedding lookup (glue).  Table is already padded to Hp columns.
    src_e = kparams["emb_p"][src_ids]                   # (B, Ts, Hp)
    tgt_e = kparams["emb_p"][tgt_ids]                   # (B, Tt, Hp)

    def to_time_major(x):                               # pad batch, transpose
        x = jnp.pad(x, ((0, Bp - B), (0, 0), (0, 0)))
        return jnp.transpose(x, (1, 0, 2))              # (T, Bp, Hp)

    src_tm = to_time_major(src_e)
    tgt_tm = to_time_major(tgt_e)

    zeros = jnp.zeros((num_layers, Bp, Hp), jnp.float32)
    _, src_h, src_c = run_multilayer_lstm(src_tm, zeros, zeros, kparams["enc"])
    dec_out_tm, tgt_h, tgt_c = run_multilayer_lstm(
        tgt_tm, src_h, src_c, kparams["dec"])

    # Final projection (tiled Pallas GEMM + bias), then unpad.
    x2d = dec_out_tm.reshape(Tt * Bp, Hp)
    logits2d = matmul_bias(x2d, kparams["fc_w_t"], kparams["fc_b"])
    logits = logits2d.reshape(Tt, Bp, -1)[:, :B, :vocab_size]
    logits = jnp.transpose(logits, (1, 0, 2))           # (B, Tt, V)

    unpad = lambda s: s[:, :B, :H]
    return (logits,
            (unpad(src_h), unpad(src_c)),
            (unpad(tgt_h), unpad(tgt_c)))


# ----------------------------------------------------------------------------
# Pure-JAX reference (lax.scan) used for a correctness check.
# ----------------------------------------------------------------------------
def _ref_lstm_layer(x_tm, h0, c0, p):
    H = h0.shape[-1]
    w_ih, w_hh = p["w_ih"], p["w_hh"]
    b = p["b_ih"] + p["b_hh"]

    def step(carry, x_t):
        h, c = carry
        gates = x_t @ w_ih.T + h @ w_hh.T + b
        i = jax.nn.sigmoid(gates[:, 0 * H:1 * H])
        f = jax.nn.sigmoid(gates[:, 1 * H:2 * H])
        g = jnp.tanh(gates[:, 2 * H:3 * H])
        o = jax.nn.sigmoid(gates[:, 3 * H:4 * H])
        c_new = f * c + i * g
        h_new = o * jnp.tanh(c_new)
        return (h_new, c_new), h_new

    (hT, cT), outs = jax.lax.scan(step, (h0, c0), x_tm)
    return outs, hT, cT


def _ref_forward(raw, src_ids, tgt_ids, num_layers, embed_size):
    B = src_ids.shape[0]
    H = embed_size
    src_tm = jnp.transpose(raw["emb"][src_ids], (1, 0, 2))
    tgt_tm = jnp.transpose(raw["emb"][tgt_ids], (1, 0, 2))

    def run(x_tm, h0s, c0s, layers):
        hs, cs, inp = [], [], x_tm
        for l, p in enumerate(layers):
            inp, hT, cT = _ref_lstm_layer(inp, h0s[l], c0s[l], p)
            hs.append(hT)
            cs.append(cT)
        return inp, jnp.stack(hs), jnp.stack(cs)

    zeros = jnp.zeros((num_layers, B, H), jnp.float32)
    _, sh, sc = run(src_tm, zeros, zeros, raw["enc"])
    tgt_out, th, tc = run(tgt_tm, sh, sc, raw["dec"])
    logits = tgt_out @ raw["fc_w"].T + raw["fc_b"]        # (Tt, B, V)
    return jnp.transpose(logits, (1, 0, 2)), (sh, sc), (th, tc)


if __name__ == "__main__":
    VOCAB = 16
    EMBED = 32
    NUM_LAYERS = 2
    BATCH = 2
    SRC_T = 8
    TGT_T = 8

    key = jax.random.PRNGKey(0)
    k_param, k_src, k_tgt = jax.random.split(key, 3)

    raw = make_params(k_param, VOCAB, EMBED, NUM_LAYERS)
    kparams = prepare_kernel_params(raw, EMBED, VOCAB)

    src = jax.random.randint(k_src, (BATCH, SRC_T), 0, VOCAB, jnp.int32)
    tgt = jax.random.randint(k_tgt, (BATCH, TGT_T), 0, VOCAB, jnp.int32)

    logits, (src_h, src_c), (tgt_h, tgt_c) = barline_s2s_forward(
        kparams, src, tgt, num_layers=NUM_LAYERS, embed_size=EMBED,
        vocab_size=VOCAB)
    jax.block_until_ready((logits, src_h, src_c, tgt_h, tgt_c))

    # Sanity check against the pure-JAX reference (fp32 everywhere).
    r_logits, (r_sh, r_sc), (r_th, r_tc) = _ref_forward(
        raw, src, tgt, NUM_LAYERS, EMBED)
    assert logits.shape == (BATCH, TGT_T, VOCAB)
    assert src_h.shape == (NUM_LAYERS, BATCH, EMBED)
    TOL = 1e-3
    assert jnp.allclose(logits, r_logits, atol=TOL), "logits mismatch"
    assert jnp.allclose(src_h, r_sh, atol=TOL), "encoder hidden mismatch"
    assert jnp.allclose(src_c, r_sc, atol=TOL), "encoder cell mismatch"
    assert jnp.allclose(tgt_h, r_th, atol=TOL), "decoder hidden mismatch"
    assert jnp.allclose(tgt_c, r_tc, atol=TOL), "decoder cell mismatch"

    print("KERNEL_OK")
</pallas_src>

<mosaic_0001>
module attributes {stable_mosaic.version = 11 : i64} {
  func.func @_matmul_bias_kernel(%arg0: i32, %arg1: i32, %arg2: i32, %arg3: memref<64x128xf32, #tpu.memory_space<vmem>>, %arg4: memref<128x256xf32, #tpu.memory_space<vmem>>, %arg5: memref<1x256xf32, #tpu.memory_space<vmem>>, %arg6: memref<64x256xf32, #tpu.memory_space<vmem>>, %arg7: memref<64x256xf32, #tpu.memory_space<vmem>>) attributes {dimension_semantics = [#tpu.dimension_semantics<parallel>, #tpu.dimension_semantics<parallel>, #tpu.dimension_semantics<arbitrary>], iteration_bounds = array<i64: 1, 2, 1>, scalar_prefetch = 0 : i64, scratch_operands = 1 : i64, tpu.core_type = #tpu.core_type<tc>, window_params = [{transform_indices = @transform_0, window_bounds = array<i64: 64, 128>}, {transform_indices = @transform_1, window_bounds = array<i64: 128, 256>}, {transform_indices = @transform_2, window_bounds = array<i64: 1, 256>}, {transform_indices = @transform_3, window_bounds = array<i64: 64, 256>}]} {
    %c0_i32 = arith.constant 0 : i32
    %0 = arith.cmpi eq, %arg2, %c0_i32 : i32
    %1 = arith.extui %0 : i1 to i32
    %c0_i32_0 = arith.constant 0 : i32
    %2 = arith.cmpi ne, %1, %c0_i32_0 : i32
    scf.if %2 {
      %cst_10 = arith.constant 0.000000e+00 : f32
      %12 = vector.broadcast %cst_10 : f32 to vector<64x256xf32>
      %c0_11 = arith.constant 0 : index
      %c0_12 = arith.constant 0 : index
      %13 = vector.load %arg7[%c0_11, %c0_12] : memref<64x256xf32, #tpu.memory_space<vmem>>, vector<64x256xf32>
      tpu.vector_store %arg7[%c0_11, %c0_12], %12 {strides = array<i32>} : memref<64x256xf32, #tpu.memory_space<vmem>>, vector<64x256xf32>,
    } else {
    }
    %c0 = arith.constant 0 : index
    %c0_1 = arith.constant 0 : index
    %3 = vector.load %arg7[%c0, %c0_1] : memref<64x256xf32, #tpu.memory_space<vmem>>, vector<64x256xf32>
    %c0_2 = arith.constant 0 : index
    %c0_3 = arith.constant 0 : index
    %4 = vector.load %arg3[%c0_2, %c0_3] : memref<64x128xf32, #tpu.memory_space<vmem>>, vector<64x128xf32>
    %c0_4 = arith.constant 0 : index
    %c0_5 = arith.constant 0 : index
    %5 = vector.load %arg4[%c0_4, %c0_5] : memref<128x256xf32, #tpu.memory_space<vmem>>, vector<128x256xf32>
    %cst = arith.constant dense<0.000000e+00> : vector<64x256xf32>
    %6 = tpu.matmul %4, %5, %cst {dimension_numbers = #tpu.dot_dimension_numbers<[1], [0], [0], [1], [0, 0, 1, 1], [], []>} : vector<64x128xf32>, vector<128x256xf32>, vector<64x256xf32> -> vector<64x256xf32>
    %7 = arith.addf %3, %6 : vector<64x256xf32>
    %c0_6 = arith.constant 0 : index
    %c0_7 = arith.constant 0 : index
    %8 = vector.load %arg7[%c0_6, %c0_7] : memref<64x256xf32, #tpu.memory_space<vmem>>, vector<64x256xf32>
    tpu.vector_store %arg7[%c0_6, %c0_7], %7 {strides = array<i32>} : memref<64x256xf32, #tpu.memory_space<vmem>>, vector<64x256xf32>,
    %c0_i32_8 = arith.constant 0 : i32
    %9 = arith.cmpi eq, %arg2, %c0_i32_8 : i32
    %10 = arith.extui %9 : i1 to i32
    %c0_i32_9 = arith.constant 0 : i32
    %11 = arith.cmpi ne, %10, %c0_i32_9 : i32
    scf.if %11 {
      %c0_10 = arith.constant 0 : index
      %c0_11 = arith.constant 0 : index
      %12 = vector.load %arg7[%c0_10, %c0_11] : memref<64x256xf32, #tpu.memory_space<vmem>>, vector<64x256xf32>
      %c0_12 = arith.constant 0 : index
      %c0_13 = arith.constant 0 : index
      %13 = vector.load %arg5[%c0_12, %c0_13] : memref<1x256xf32, #tpu.memory_space<vmem>>, vector<1x256xf32>
      %14 = vector.broadcast %13 : vector<1x256xf32> to vector<64x256xf32>
      %15 = arith.addf %12, %14 : vector<64x256xf32>
      %c0_14 = arith.constant 0 : index
      %c0_15 = arith.constant 0 : index
      %16 = vector.load %arg6[%c0_14, %c0_15] : memref<64x256xf32, #tpu.memory_space<vmem>>, vector<64x256xf32>
      tpu.vector_store %arg6[%c0_14, %c0_15], %15 {strides = array<i32>} : memref<64x256xf32, #tpu.memory_space<vmem>>, vector<64x256xf32>,
    } else {
    }
    return
  }
  func.func @transform_0(%arg0: i32, %arg1: i32, %arg2: i32) -> (i32, i32) {
    %c0_i32 = arith.constant 0 : i32
    return %arg0, %arg2 : i32, i32
  }
  func.func @transform_1(%arg0: i32, %arg1: i32, %arg2: i32) -> (i32, i32) {
    %c0_i32 = arith.constant 0 : i32
    return %arg2, %arg1 : i32, i32
  }
  func.func @transform_2(%arg0: i32, %arg1: i32, %arg2: i32) -> (i32, i32) {
    %c0_i32 = arith.constant 0 : i32
    %c0_i32_0 = arith.constant 0 : i32
    return %c0_i32, %arg1 : i32, i32
  }
  func.func @transform_3(%arg0: i32, %arg1: i32, %arg2: i32) -> (i32, i32) {
    %c0_i32 = arith.constant 0 : i32
    return %arg0, %arg1 : i32, i32
  }
}

</mosaic_0001>

<bundles_post_ra>
// kernel: tpu_custom_call.1
= control target key start
LH: loop header
LB: loop body
LE: loop exit
PB: predicated region body
PF: predicated region fallthrough
CT: control target
= control target key end

     0   :  { %8 = vsyncpa [#allocation4], 0  ;;  %s1315_s0 = inlined_call_operand.hbm [shape: f32[64,128], index: 0, kind: input, shape index: {}]   ;;  %s1316_s1 = inlined_call_operand.hbm [shape: f32[128,512], index: 1, kind: input, shape index: {}]   ;;  %s1317_s2 = inlined_call_operand.hbm [shape: f32[1,512], index: 2, kind: input, shape index: {}]   ;;  %s1318_s3 = inlined_call_operand.hbm [shape: f32[64,512], index: 3, kind: output, shape index: {}]  }
   0x1   :  { %9 = vsyncpa [#allocation7], 0 }
   0x2   :  { %11 = vsyncpa [#allocation7 + $0x1], 0 }
   0x3   :  { %12 = vsyncpa [#allocation5], 0 }
   0x4   :  { %14 = vsyncpa [#allocation5 + $0x1], 0  ;;  %s1053_s12 = smov 0   ;;  %s1055_s13 = smov 0  }
   0x5   :  { %s1057_s14 = smov 0   ;;  %s1059_s15 = smov 0  }
   0x6   :  { %s1061_s16 = smov 0   ;;  %s1063_s17 = smov 0  }
   0x7 LB: > { %s35_s18 = sadd.s32 1, %s1014_s16  ;;  %s76_s19 = sadd.s32 1, %s1006_s14  ;;  %s1018_s17 = sphi %s1063_s17, %s20_s17   ;;  %s1014_s16 = sphi %s1061_s16, %s1338_s16   ;;  %s1010_s15 = sphi %s1059_s15, %s1337_s15   ;;  %s1006_s14 = sphi %s1057_s14, %s1336_s14   ;;  %s1002_s13 = sphi %s1055_s13, %s1335_s13   ;;  %s998_s12 = sphi %s1053_s12, %s1334_s12  }
   0x8   : > { %p37_p0 = scmp.ge.s32.totalorder %s35_s18, 2  ;;  %p83_p1 = scmp.ne.s32.totalorder %s1006_s14, %s1002_s13 }
   0x9   : > { %p84_p2 = scmp.eq.s32.totalorder %s1018_s17, 0  ;;  %p791_p5 = scmp.lt.s32.totalorder %s1018_s17, 2 }
   0xa   : > { %s1340_s18 = smov (%p37_p0, %s35_s18), 0  ;;  %s184_s21 = sand.u32 1, %s1018_s17  }
   0xb   : > { %p85_p4 = por %p84_p2, %p83_p1  ;;  %s72_s20 = ssub.s32 %s1014_s16, %s1340_s18 }
   0xc   : > { %p74_p6 = scmp.eq.s32.totalorder %s72_s20, 0  ;;  %s186_s22 = sand.u32 1, %s1006_s14  }
   0xd   : > { %s730_s23 = sshll.u32 %s1014_s16, 8  ;;  %s714_s25 = sshll.u32 %s186_s22, 8 }
   0xe   : > { %s1101_s24 = scalar_select %p74_p6, %s1006_s14, %s76_s19  }
   0xf   : > { %s197_s28 = scalar_lea.hbm %s1316_s1, %s730_s23  ;;  %p1108_p7 = pnand %p791_p5, %p85_p4 }
  0x10   : > { %s188_s30 = scalar_lea.vmem [#allocation6], %s714_s25  ;;  %s1112_s5 = scalar_lea.sflag [#allocation7], %s184_s21 }
  0x11   : > { %s198_s4 = sshll.u32 %s188_s30, 4  ;;  %p1320_p8 = pneg %p1108_p7  ;;  %s199_s4 = int_to_ptr.vmem [resolvable:$true] %s198_s4 }
  0x12   : > { %s865_s6 = scalar_lea.vmem %s199_s4, 4096  ;;  %s1020_s7 = smov [#allocation6]  }
  0x13   : > { %p866_p9 = scmp.ne.s32.totalorder %s199_s4, %s865_s6  ;;  %s870_s8 = sshll.u32 %s1020_s7, 4  ;;  %s871_s8 = int_to_ptr.vmem [resolvable:$false] %s870_s8 }
  0x14   : > { %s872_s9 = scalar_lea.vmem %s871_s8, 8192  ;;  %p873_p12 = scmp.lt.s32.totalorder %s199_s4, %s871_s8 }
  0x15   : > { %p868_p10 = pnand %p866_p9, %p1320_p8  ;;  %p874_p13 = scmp.lt.s32.totalorder %s872_s9, %s865_s6 }
  0x17   : > { %p869_p11 = pneg %p868_p10  ;;  %p875_p0 = por %p874_p13, %p873_p12 }
  0x19   : > { %p876_p2 = pnand %p875_p0, %p869_p11 }
  0x1b   : > { %879 = shalt.err (!%p876_p2)
}
  0x1c   : > { %s1021_s10 = smov 512   ;;  %s1022_s11 = smov 256  }
  0x1d   : > { %s1023_s19 = smov 16   ;;  %s1123_s20 = sadd.s32 4294967295, %s1018_s17  }
  0x1e   : > { %782 = dma.hbm_to_vmem [thread:$0]  (!%p1108_p7), %s197_s28, 4096, %s199_s4, %s1112_s5, %s1021_s10, %s1022_s11, %s1023_s19  }
  0x1f   : > { %s710_s21 = sadd.s32 4294967294, %s1018_s17   ;;  %p89_p4 = scmp.ne.s32.totalorder %s1002_s13, %s998_s12 }
  0x20   : > { %p1319_p5 = scmp.eq.s32.totalorder %s1123_s20, 0  ;;  %p141_p6 = scmp.eq.s32.totalorder %s1123_s20, 1 }
  0x21   : > { %p147_p9 = scmp.eq.s32.totalorder %s710_s21, 1  ;;  %p711_p11 = scmp.ge.s32.totalorder %s1018_s17, 1 }
  0x22   : > { %p1132_p10 = por %p1319_p5, %p89_p4  ;;  %p1140_p12 = por %p141_p6, %p83_p1 }
  0x23   : > { %p1144_p13 = por %p147_p9, %p89_p4  ;;  %p154_p0 = scmp.lt.s32.totalorder %s1018_s17, 3 }
  0x24   : > { %s1324_s25 = scalar_select %p1140_p12, 1, 0 }
  0x25   : > { %s1325_s26 = scalar_select %p1144_p13, 1, 0 }
  0x26   : > { %p1149_p2 = pnand %p711_p11, %p154_p0  ;;  %s1024_s28 = smov [#allocation3]  }
  0x27   : > { %s170_s30 = sshll.u32 %s1024_s28, 4  ;;  %s717_s4 = sshll.u32 %s186_s22, 1  ;;  %s171_s30 = int_to_ptr.vmem [resolvable:$true] %s170_s30 }
  0x28   : > { %p775_p3 = pneg %p1149_p2  ;;  %s731_s6 = sshll.u32 %s1014_s16, 5 }
  0x29   : > { %s1167_s10 = scalar_lea.hbm %s1317_s2, %s731_s6  ;;  %s212_s11 = scalar_lea.vmem [#allocation8], %s717_s4 }
  0x2a   : > { %p1160_p1 = pnand %p775_p3, %p1319_p5  ;;  %s220_s19 = sshll.u32 %s212_s11, 4  ;;  %s221_s19 = int_to_ptr.vmem [resolvable:$true] %s220_s19 }
  0x2b   : > { %s891_s21 = scalar_lea.vmem %s171_s30, 1024  ;;  %p899_p0 = scmp.lt.s32.totalorder %s171_s30, %s171_s30 }
  0x2c   : > { %p882_p4 = pneg %p1160_p1  ;;  %p892_p6 = scmp.ne.s32.totalorder %s171_s30, %s891_s21 }
  0x2d   : > { %p900_p3 = scmp.lt.s32.totalorder %s891_s21, %s891_s21 }
  0x2e   : > { %p894_p9 = pnand %p892_p6, %p882_p4 }
  0x2f   : > { %p901_p5 = por %p900_p3, %p899_p0 }
  0x30   : > { %p895_p11 = pneg %p894_p9 }
  0x32   : > { %p902_p8 = pnand %p901_p5, %p895_p11 }
  0x34   : > { %905 = shalt.err (!%p902_p8)
}
  0x35   : > { %s1025_s22 = smov 128   ;;  %s1026_s28 = smov 8  }
  0x36   : > { %778 = dma.hbm_to_vmem [thread:$0]  (!%p1160_p1), %s1315_s0, 1024, %s171_s30, [#allocation4], %s1025_s22, %s1025_s22, %s1026_s28  }
  0x37   : > { %s919_s8 = scalar_lea.vmem %s221_s19, 32  ;;  %p1328_p12 = pneg %p1108_p7 }
  0x38   : > { %p920_p13 = scmp.ne.s32.totalorder %s221_s19, %s919_s8  ;;  %s1027_s9 = smov [#allocation8]  }
  0x39   : > { %s924_s11 = sshll.u32 %s1027_s9, 4  ;;  %s925_s11 = int_to_ptr.vmem [resolvable:$false] %s924_s11 }
  0x3a   : > { %p922_p4 = pnand %p920_p13, %p1328_p12  ;;  %s926_s21 = scalar_lea.vmem %s925_s11, 64 }
  0x3b   : > { %p927_p8 = scmp.lt.s32.totalorder %s221_s19, %s925_s11  ;;  %p928_p5 = scmp.lt.s32.totalorder %s926_s21, %s919_s8 }
  0x3c   : > { %p923_p6 = pneg %p922_p4 }
  0x3d   : > { %p929_p9 = por %p928_p5, %p927_p8 }
  0x3f   : > { %p930_p11 = pnand %p929_p9, %p923_p6 }
  0x41   : > { %933 = shalt.err (!%p930_p11)
}
  0x42   : > { %785 = dma.hbm_to_vmem [thread:$0]  (!%p1108_p7), %s1167_s10, 32, %s221_s19, %s1112_s5  }
  0x43   : > { %229 = sbr.rel (%p1149_p2) target bundleno = 335 (0x14f), region = 32  ;;  %p1329_p12 = scmp.eq.s32.totalorder (!%p1149_p2), %s1123_s20, 0 }
  0x48   : > { %985 = dma.done.wait (%p1329_p12), [#allocation4], 1024   ;;  %p1330_p13 = pmov %p1329_p12 }
  0x49   : > { %s235_s30 = sand.u32 1, %s1123_s20   ;;  %s1191_s7 = sand.u32 1, %s1002_s13  }
  0x4a   : > { %987 = vsyncadd (%p1330_p13), [#allocation4], 4294966272  ;;  %s722_s29 = sshll.u32 %s1191_s7, 8  ;;  %s236_s22 = scalar_lea.sflag [#allocation7], %s235_s30 }
  0x4b   : > { %s1194_s28 = scalar_lea.vmem [#allocation6], %s722_s29 }
  0x4c   : > { %989 = dma.done.wait (%p1132_p10), %s236_s22, 4128  }
  0x4d   : > { %991 = vsyncadd (%p1132_p10), %s236_s22, 4294963168  ;;  %v1028_v0 = vmov 0.0   ;;  %v357_v1 = vld [vmem:[%s1194_s28 + $0xf8] sm:$0xff]  ;;  %v356_v2 = vld [vmem:[%s1194_s28 + $0xf0] sm:$0xff]  ;;  %v524_v41 = vlaneseq  ;;  %s723_s5 = sshll.u32 %s1191_s7, 1  ;;  %s724_s23 = sshll.u32 %s1191_s7, 7 }
  0x4e   : > { %422 = vmatprep.mubr.f32.mxu0 %v1028_v0  ;;  %446 = vmatprep.mubr.f32.mxu1 %v1028_v0  ;;  %v355_v3 = vld [vmem:[%s1194_s28 + $0xe8] sm:$0xff]  ;;  %v354_v4 = vld [vmem:[%s1194_s28 + $0xe0] sm:$0xff]  ;;  %v353_v5 = vld [vmem:[%s1194_s28 + $0xd8] sm:$0xff]  ;;  %s248_s20 = scalar_lea.vmem [#allocation8], %s723_s5  ;;  %s1242_s27 = scalar_lea.vmem [#allocation9], %s724_s23 }
  0x4f   : > { %358 = vmatprep.subr.mxu0 %v357_v1  ;;  %733 = vmatprep.subr.mxu1 %v357_v1  ;;  %v352_v6 = vld [vmem:[%s1194_s28 + $0xd0] sm:$0xff]  ;;  %v351_v7 = vld [vmem:[%s1194_s28 + $0xc8] sm:$0xff]  ;;  %v350_v8 = vld [vmem:[%s1194_s28 + $0xc0] sm:$0xff]  ;;  %v525_v42 = vshrl.u32 %v524_v41, 7  ;;  %s732_s10 = sshll.u32 %s1010_s15, 8  ;;  %s583_s19 = sshll.u32 %s1242_s27, 4  ;;  %s1263_s19 = int_to_ptr.vmem [resolvable:$true] %s583_s19 }
  0x50   : > { %359 = vmatpush1.msra.mxu0 %v356_v2  ;;  %749 = vmatpush1.msra.mxu1 %v356_v2  ;;  %v349_v9 = vld [vmem:[%s1194_s28 + $0xb8] sm:$0xff]  ;;  %v348_v10 = vld [vmem:[%s1194_s28 + $0xb0] sm:$0xff]  ;;  %v347_v11 = vld [vmem:[%s1194_s28 + $0xa8] sm:$0xff]  ;;  %s1261_s15 = scalar_lea.hbm %s1318_s3, %s732_s10  ;;  %s567_s8 = scalar_lea.sflag [#allocation5], %s1191_s7 }
  0x51   : > { %360 = vmatprep.subr.mxu0 %v355_v3  ;;  %734 = vmatprep.subr.mxu1 %v355_v3  ;;  %v346_v12 = vld [vmem:[%s1194_s28 + $0xa0] sm:$0xff]  ;;  %v345_v13 = vld [vmem:[%s1194_s28 + $0x98] sm:$0xff]  ;;  %v344_v14 = vld [vmem:[%s1194_s28 + $0x90] sm:$0xff]  ;;  %v526_v43 = vsub.s32 0, %v525_v42  ;;  %v530_v45 = vsub.s32 1, %v525_v42  ;;  %s934_s9 = scalar_lea.vmem %s1263_s19, 2048 }
  0x52   : > { %361 = vmatpush1.msra.mxu0 %v354_v4  ;;  %750 = vmatpush1.msra.mxu1 %v354_v4  ;;  %v343_v15 = vld [vmem:[%s1194_s28 + $0x88] sm:$0xff]  ;;  %v342_v16 = vld [vmem:[%s1194_s28 + $0x80] sm:$0xff]  ;;  %v341_v17 = vld [vmem:[%s1194_s28 + $0x78] sm:$0xff]  ;;  %p935_p7 = scmp.ne.s32.totalorder %s1263_s19, %s934_s9  ;;  %p1331_p10 = scmp.ne.s32.totalorder %s1324_s25, 0 }
  0x53   : > { %362 = vmatprep.subr.mxu0 %v353_v5  ;;  %735 = vmatprep.subr.mxu1 %v353_v5  ;;  %v340_v18 = vld [vmem:[%s1194_s28 + $0x70] sm:$0xff]  ;;  %v339_v19 = vld [vmem:[%s1194_s28 + $0x68] sm:$0xff]  ;;  %v338_v20 = vld [vmem:[%s1194_s28 + $0x60] sm:$0xff]  ;;  %s1029_s11 = smov [#allocation9]  }
  0x54   : > { %363 = vmatpush1.msra.mxu0 %v352_v6  ;;  %751 = vmatpush1.msra.mxu1 %v352_v6  ;;  %v337_v21 = vld [vmem:[%s1194_s28 + $0x58] sm:$0xff]  ;;  %v336_v22 = vld [vmem:[%s1194_s28 + $0x50] sm:$0xff]  ;;  %v335_v23 = vld [vmem:[%s1194_s28 + $0x48] sm:$0xff]  ;;  %p936_p2 = pnand %p935_p7, %p1331_p10  ;;  %s938_s21 = sshll.u32 %s1029_s11, 4  ;;  %s939_s21 = int_to_ptr.vmem [resolvable:$false] %s938_s21 }
  0x55   : > { %364 = vmatprep.subr.mxu0 %v351_v7  ;;  %736 = vmatprep.subr.mxu1 %v351_v7  ;;  %v334_v24 = vld [vmem:[%s1194_s28 + $0x40] sm:$0xff]  ;;  %v333_v25 = vld [vmem:[%s1194_s28 + $0x38] sm:$0xff]  ;;  %v332_v26 = vld [vmem:[%s1194_s28 + $0x30] sm:$0xff]  ;;  %s940_s30 = scalar_lea.vmem %s939_s21, 4096  ;;  %p941_p0 = scmp.lt.s32.totalorder %s1263_s19, %s939_s21 }
  0x56   : > { %365 = vmatpush1.msra.mxu0 %v350_v8  ;;  %752 = vmatpush1.msra.mxu1 %v350_v8  ;;  %v331_v27 = vld [vmem:[%s1194_s28 + $0x28] sm:$0xff]  ;;  %v330_v28 = vld [vmem:[%s1194_s28 + $0x20] sm:$0xff]  ;;  %v329_v29 = vld [vmem:[%s1194_s28 + $0x18] sm:$0xff]  ;;  %p937_p1 = pneg %p936_p2  ;;  %p942_p3 = scmp.lt.s32.totalorder %s940_s30, %s934_s9 }
  0x57   : > { %366 = vmatprep.subr.mxu0 %v349_v9  ;;  %737 = vmatprep.subr.mxu1 %v349_v9  ;;  %v328_v30 = vld [vmem:[%s1194_s28 + $0x10] sm:$0xff]  ;;  %v327_v31 = vld [vmem:[%s1194_s28 + $0x8] sm:$0xff]  ;;  %v326_v32 = vld [vmem:[%s1194_s28] sm:$0xff] }
  0x58   : > { %367 = vmatpush1.msra.mxu0 %v348_v10  ;;  %753 = vmatpush1.msra.mxu1 %v348_v10  ;;  %v318_v33 = vld [vmem:[#allocation3] sm:$0xff]  ;;  %v319_v35 = vld [vmem:[#allocation3 + $0x8] sm:$0xff]  ;;  %v320_v37 = vld [vmem:[#allocation3 + $0x10] sm:$0xff]  ;;  %p943_p4 = por %p942_p3, %p941_p0 }
  0x59   : > { %368 = vmatprep.subr.mxu0 %v347_v11  ;;  %738 = vmatprep.subr.mxu1 %v347_v11  ;;  %v322_v34 = vld [vmem:[#allocation3 + $0x20] sm:$0xff]  ;;  %v323_v36 = vld [vmem:[#allocation3 + $0x28] sm:$0xff]  ;;  %v324_v38 = vld [vmem:[#allocation3 + $0x30] sm:$0xff] }
  0x5a   : > { %369 = vmatpush1.msra.mxu0 %v346_v12  ;;  %754 = vmatpush1.msra.mxu1 %v346_v12  ;;  %v321_v39 = vld [vmem:[#allocation3 + $0x18] sm:$0xff]  ;;  %v522_v44 = vld [vmem:[%s248_s20] sm:$0x3]  ;;  %p944_p6 = pnand %p943_p4, %p937_p1 }
  0x5b   : > { %370 = vmatprep.subr.mxu0 %v345_v13  ;;  %739 = vmatprep.subr.mxu1 %v345_v13  ;;  %v325_v40 = vld [vmem:[#allocation3 + $0x38] sm:$0xff]  ;;  %v527_v46 = vrot.slane %v522_v44, %v526_v43  ;;  %v531_v47 = vrot.slane %v522_v44, %v530_v45 }
  0x5c   : > { %371 = vmatpush1.msra.mxu0 %v344_v14  ;;  %755 = vmatpush1.msra.mxu1 %v344_v14 }
  0x5d   : > { %372 = vmatprep.subr.mxu0 %v343_v15  ;;  %740 = vmatprep.subr.mxu1 %v343_v15 }
  0x5e   : > { %373 = vmatpush1.msra.mxu0 %v342_v16  ;;  %756 = vmatpush1.msra.mxu1 %v342_v16 }
  0x5f   : > { %374 = vmatprep.subr.mxu0 %v341_v17  ;;  %741 = vmatprep.subr.mxu1 %v341_v17 }
  0x60   : > { %375 = vmatpush1.msra.mxu0 %v340_v18  ;;  %757 = vmatpush1.msra.mxu1 %v340_v18 }
  0x61   : > { %376 = vmatprep.subr.mxu0 %v339_v19  ;;  %742 = vmatprep.subr.mxu1 %v339_v19 }
  0x62   : > { %377 = vmatpush1.msra.mxu0 %v338_v20  ;;  %758 = vmatpush1.msra.mxu1 %v338_v20 }
  0x63   : > { %378 = vmatprep.subr.mxu0 %v337_v21  ;;  %743 = vmatprep.subr.mxu1 %v337_v21 }
  0x64   : > { %379 = vmatpush1.msra.mxu0 %v336_v22  ;;  %759 = vmatpush1.msra.mxu1 %v336_v22 }
  0x65   : > { %380 = vmatprep.subr.mxu0 %v335_v23  ;;  %744 = vmatprep.subr.mxu1 %v335_v23 }
  0x66   : > { %381 = vmatpush1.msra.mxu0 %v334_v24  ;;  %760 = vmatpush1.msra.mxu1 %v334_v24 }
  0x67   : > { %382 = vmatprep.subr.mxu0 %v333_v25  ;;  %745 = vmatprep.subr.mxu1 %v333_v25 }
  0x68   : > { %383 = vmatpush1.msra.mxu0 %v332_v26  ;;  %761 = vmatpush1.msra.mxu1 %v332_v26 }
  0x69   : > { %384 = vmatprep.subr.mxu0 %v331_v27  ;;  %746 = vmatprep.subr.mxu1 %v331_v27 }
  0x6a   : > { %385 = vmatpush1.msra.mxu0 %v330_v28  ;;  %762 = vmatpush1.msra.mxu1 %v330_v28 }
  0x6b   : > { %386 = vmatprep.subr.mxu0 %v329_v29  ;;  %747 = vmatprep.subr.mxu1 %v329_v29 }
  0x6c   : > { %387 = vmatpush1.msra.mxu0 %v328_v30  ;;  %763 = vmatpush1.msra.mxu1 %v328_v30 }
  0x6d   : > { %388 = vmatprep.subr.mxu0 %v327_v31  ;;  %748 = vmatprep.subr.mxu1 %v327_v31 }
  0x6e   : > { %389 = vmatpush1.msra.mxu0 %v326_v32  ;;  %764 = vmatpush1.msra.mxu1 %v326_v32 }
  0x6f   : > { %423 = vmatmul.mubr.f32.vlgmr.msra.gmra.mxu0 %v318_v33  ;;  %447 = vmatmul.mubr.f32.vlgmr.msra.gmra.mxu1 %v322_v34 }
  0x70   : > { %428 = vmatprep.mubr.f32.mxu0 %v1028_v0  ;;  %452 = vmatprep.mubr.f32.mxu1 %v1028_v0 }
  0x73   : > { %429 = vmatmul.mubr.f32.gmra.mxu0 %v319_v35  ;;  %453 = vmatmul.mubr.f32.gmra.mxu1 %v323_v36 }
  0x74   : > { %434 = vmatprep.mubr.f32.mxu0 %v1028_v0  ;;  %458 = vmatprep.mubr.f32.mxu1 %v1028_v0 }
  0x77   : > { %435 = vmatmul.mubr.f32.gmra.mxu0 %v320_v37  ;;  %459 = vmatmul.mubr.f32.gmra.mxu1 %v324_v38 }
  0x78   : > { %440 = vmatprep.mubr.f32.mxu0 %v1028_v0  ;;  %464 = vmatprep.mubr.f32.mxu1 %v1028_v0 }
  0x7b   : > { %441 = vmatmul.mubr.f32.gmra.mxu0 %v321_v39  ;;  %465 = vmatmul.mubr.f32.gmra.mxu1 %v325_v40 }
 0x12f   : > { %v424_v48 = vpop.f32.mrf.mxu0  ;;  %v448_v49 = vpop.f32.mrf.mxu1 }
 0x130   : > { %v534_v50 = vadd.f32 %v527_v46, %v424_v48  ;;  %v542_v51 = vadd.f32 %v527_v46, %v448_v49 }
 0x131   : > { %v426_v52 = vpop.f32.mrf.mxu0  ;;  %v450_v53 = vpop.f32.mrf.mxu1 }
 0x132   : > { %550 = vst [vmem:[%s1242_s27] sm:$0xff] %v534_v50  ;;  %558 = vst [vmem:[%s1242_s27 + $0x40] sm:$0xff] %v542_v51  ;;  %v535_v54 = vadd.f32 %v531_v47, %v426_v52  ;;  %v543_v55 = vadd.f32 %v531_v47, %v450_v53 }
 0x133   : > { %v430_v56 = vpop.f32.mrf.mxu0  ;;  %v454_v57 = vpop.f32.mrf.mxu1 }
 0x134   : > { %551 = vst [vmem:[%s1242_s27 + $0x8] sm:$0xff] %v535_v54  ;;  %559 = vst [vmem:[%s1242_s27 + $0x48] sm:$0xff] %v543_v55  ;;  %v536_v58 = vadd.f32 %v527_v46, %v430_v56  ;;  %v544_v59 = vadd.f32 %v527_v46, %v454_v57 }
 0x135   : > { %v432_v60 = vpop.f32.mrf.mxu0  ;;  %v456_v61 = vpop.f32.mrf.mxu1 }
 0x136   : > { %552 = vst [vmem:[%s1242_s27 + $0x10] sm:$0xff] %v536_v58  ;;  %560 = vst [vmem:[%s1242_s27 + $0x50] sm:$0xff] %v544_v59  ;;  %v537_v62 = vadd.f32 %v531_v47, %v432_v60  ;;  %v545_v63 = vadd.f32 %v531_v47, %v456_v61 }
 0x137   : > { %v436_v0 = vpop.f32.mrf.mxu0  ;;  %v460_v1 = vpop.f32.mrf.mxu1 }
 0x138   : > { %553 = vst [vmem:[%s1242_s27 + $0x18] sm:$0xff] %v537_v62  ;;  %561 = vst [vmem:[%s1242_s27 + $0x58] sm:$0xff] %v545_v63  ;;  %v538_v2 = vadd.f32 %v527_v46, %v436_v0  ;;  %v546_v3 = vadd.f32 %v527_v46, %v460_v1 }
 0x139   : > { %v438_v4 = vpop.f32.mrf.mxu0  ;;  %v462_v5 = vpop.f32.mrf.mxu1 }
 0x13a   : > { %554 = vst [vmem:[%s1242_s27 + $0x20] sm:$0xff] %v538_v2  ;;  %562 = vst [vmem:[%s1242_s27 + $0x60] sm:$0xff] %v546_v3  ;;  %v539_v6 = vadd.f32 %v531_v47, %v438_v4  ;;  %v547_v7 = vadd.f32 %v531_v47, %v462_v5 }
 0x13b   : > { %v442_v8 = vpop.f32.mrf.mxu0  ;;  %v466_v9 = vpop.f32.mrf.mxu1 }
 0x13c   : > { %555 = vst [vmem:[%s1242_s27 + $0x28] sm:$0xff] %v539_v6  ;;  %563 = vst [vmem:[%s1242_s27 + $0x68] sm:$0xff] %v547_v7  ;;  %v540_v10 = vadd.f32 %v527_v46, %v442_v8  ;;  %v548_v11 = vadd.f32 %v527_v46, %v466_v9 }
 0x13d   : > { %v444_v12 = vpop.f32.mrf.mxu0  ;;  %v468_v13 = vpop.f32.mrf.mxu1 }
 0x13e   : > { %556 = vst [vmem:[%s1242_s27 + $0x30] sm:$0xff] %v540_v10  ;;  %564 = vst [vmem:[%s1242_s27 + $0x70] sm:$0xff] %v548_v11  ;;  %v541_v14 = vadd.f32 %v531_v47, %v444_v12  ;;  %v549_v15 = vadd.f32 %v531_v47, %v468_v13 }
 0x140   : > { %557 = vst [vmem:[%s1242_s27 + $0x38] sm:$0xff] %v541_v14  ;;  %565 = vst [vmem:[%s1242_s27 + $0x78] sm:$0xff] %v549_v15 }
 0x141   : > { %947 = shalt.err (!%p944_p6)
}
 0x142   : > { %s948_s29 = scalar_lea.hbm %s1261_s15, 2048  ;;  %s952_s5 = scalar_lea.hbm %s1318_s3, 4096 }
 0x143   : > { %p949_p8 = scmp.ne.s32.totalorder %s1261_s15, %s948_s29  ;;  %p953_p11 = scmp.lt.s32.totalorder %s1261_s15, %s1318_s3 }
 0x144   : > { %p954_p12 = scmp.lt.s32.totalorder %s952_s5, %s948_s29 }
 0x145   : > { %p950_p5 = pnand %p949_p8, %p1331_p10 }
 0x146   : > { %p955_p13 = por %p954_p12, %p953_p11 }
 0x147   : > { %p951_p9 = pneg %p950_p5 }
 0x149   : > { %p956_p7 = pnand %p955_p13, %p951_p9 }
 0x14b   : > { %959 = shalt.err (!%p956_p7)
}
 0x14c   : > { %s1030_s27 = smov 256   ;;  %s1031_s10 = smov 512  }
 0x14d   : > { %s1032_s6 = smov 16  }
 0x14e   : > { %773 = dma.vmem_to_hbm [thread:$0]  (%p1331_p10), %s1263_s19, 2048, %s1261_s15, %s567_s8, %s1030_s27, %s1031_s10, %s1032_s6  }
 0x14f PF: > { %s598_s4 = sand.u32 1, %s998_s12   ;;  %p1332_p2 = scmp.ne.s32.totalorder %s1325_s26, 0 }
 0x150   : > { %p1333_p1 = scmp.ge.s32.totalorder %s1018_s17, 2  ;;  %s599_s9 = scalar_lea.sflag [#allocation5], %s598_s4 }
 0x152   : > { %p787_p0 = pnand %p1333_p1, %p1332_p2 }
 0x154   : > { %p788_p3 = pneg %p787_p0 }
 0x156   : > { %993 = dma.done.wait (%p788_p3), %s599_s9, 2048  }
 0x157   : > { %995 = vsyncadd (%p788_p3), %s599_s9, 4294965248  ;;  %s20_s17 = sadd.s32 1, %s1018_s17   ;;  %s1334_s12 = smov %s1002_s13 }
 0x158   : > { %p17_p4 = scmp.ge.s32.totalorder %s20_s17, 4   ;;  %s1335_s13 = smov %s1006_s14 }
 0x159   : > { %s1336_s14 = smov %s1101_s24  ;;  %s1337_s15 = smov %s1014_s16 }
 0x15a   : > { %s1338_s16 = smov %s1340_s18  ;;  %19 = sbr.rel (!%p17_p4) target bundleno = 7 (0x7), region = 102 }
 0x15f   :  { %604 = vsyncpa [#allocation4], 1 }
 0x160   :  { %606 = vsyncpa [#allocation4 + $0x1], 1 }
 0x161   :  { %607 = vsyncpa [#allocation7], 1 }
 0x162   :  { %609 = vsyncpa [#allocation7 + $0x1], 1 }
 0x163   :  { %610 = vsyncpa [#allocation5], 1 }
 0x164   :  { %612 = vsyncpa [#allocation5 + $0x1], 1 }

</bundles_post_ra>
